<compile_context>
chip_gen: v7x
topology: tpu7x:2x2x1
jax: 0.10.0
libtpu: 0.0.40
codegen_flags: <defaults>
</compile_context>

<pallas_src>
import functools

import jax
import jax.numpy as jnp
from jax.experimental import pallas as pl
from jax.experimental.pallas import tpu as pltpu


HIDDEN = 64
FUSED_HIDDEN = 2 * HIDDEN     # actor hidden || critic hidden, side by side on lanes
OUT_WIDTH = 128               # lane-dense fused head width and output width


def _actor_critic_kernel(x_ref, act_ref,
                         w1_ref, b1_ref, w2_ref, b2_ref, w3_ref, b3_ref,
                         out_ref, *, action_dim, matmul_dtype):
    x = x_ref[...]                                         # (TB, S) f32

    def mm(a, w_ref_):
        return jnp.dot(a.astype(matmul_dtype),
                       w_ref_[...].astype(matmul_dtype),
                       preferred_element_type=jnp.float32)

    # Fused actor|critic MLP: cols [0, 64) actor path, [64, 128) critic path.
    h1 = jnp.tanh(mm(x, w1_ref) + b1_ref[...])             # (TB, 128)
    h2 = jnp.tanh(mm(h1, w2_ref) + b2_ref[...])            # (TB, 128), block-diag W2
    head = mm(h2, w3_ref) + b3_ref[...]                    # (TB, 128): [0,A)=logits, col A=value

    lane = jax.lax.broadcasted_iota(jnp.int32, head.shape, 1)
    neg_big = jnp.float32(-1e30)                           # finite mask (avoid 0*inf NaN)

    # Softmax / log-softmax over the first `action_dim` lanes only.
    logits = jnp.where(lane < action_dim, head, neg_big)
    m = jnp.max(logits, axis=-1, keepdims=True)
    shifted = logits - m
    e = jnp.exp(shifted)                                   # masked lanes underflow to 0
    denom = jnp.sum(e, axis=-1, keepdims=True)
    probs = e * pl.reciprocal(denom, approx=False)         # EUP reciprocal, exact
    log_probs = shifted - jnp.log(denom)

    # Categorical.log_prob(action) via one-hot gather.
    # NOTE: out-of-range actions silently produce logp == 0.0 (torch would raise).
    act = act_ref[...]                                     # (TB, 1) int32
    onehot = (lane == act).astype(jnp.float32)
    logp = jnp.sum(onehot * log_probs, axis=-1, keepdims=True)      # (TB, 1)

    # Categorical.entropy(): -sum p * log p over valid lanes.
    plogp = jnp.where(lane < action_dim, probs * log_probs, 0.0)
    ent = -jnp.sum(plogp, axis=-1, keepdims=True)                   # (TB, 1)

    # Critic value sits in lane `action_dim` of the fused head.
    value = jnp.sum(jnp.where(lane == action_dim, head, 0.0),
                    axis=-1, keepdims=True)                         # (TB, 1)

    # Single lane-dense output block: col 0 = logp, col 1 = value, col 2 = entropy.
    out_ref[...] = jnp.where(lane == 0, logp,
                   jnp.where(lane == 1, value,
                   jnp.where(lane == 2, ent, jnp.float32(0.0))))


def init_params(key, state_dim, action_dim, hidden=HIDDEN):
    """Deterministic synthetic init: weights as (in, out), biases as (1, out)."""
    ks = jax.random.split(key, 12)

    def lin(kw, kb, fan_in, fan_out):
        w = jax.random.normal(kw, (fan_in, fan_out), jnp.float32) * (1.0 / jnp.sqrt(fan_in))
        b = jax.random.normal(kb, (1, fan_out), jnp.float32) * 0.01
        return w, b

    aw1, ab1 = lin(ks[0], ks[1], state_dim, hidden)
    aw2, ab2 = lin(ks[2], ks[3], hidden, hidden)
    aw3, ab3 = lin(ks[4], ks[5], hidden, action_dim)
    cw1, cb1 = lin(ks[6], ks[7], state_dim, hidden)
    cw2, cb2 = lin(ks[8], ks[9], hidden, hidden)
    cw3, cb3 = lin(ks[10], ks[11], hidden, 1)
    return (aw1, ab1, aw2, ab2, aw3, ab3, cw1, cb1, cw2, cb2, cw3, cb3)


def fuse_params(params, action_dim, hidden=HIDDEN):
    """Build fused actor||critic weights (done once, outside the kernel)."""
    (aw1, ab1, aw2, ab2, aw3, ab3, cw1, cb1, cw2, cb2, cw3, cb3) = params
    assert action_dim + 1 <= OUT_WIDTH, "action_dim + 1 must fit in the fused head width"

    w1f = jnp.concatenate([aw1, cw1], axis=1)                       # (S, 128)
    b1f = jnp.concatenate([ab1, cb1], axis=1)                       # (1, 128)

    w2f = jnp.zeros((FUSED_HIDDEN, FUSED_HIDDEN), jnp.float32)      # block-diag (128, 128)
    w2f = w2f.at[:hidden, :hidden].set(aw2).at[hidden:, hidden:].set(cw2)
    b2f = jnp.concatenate([ab2, cb2], axis=1)                       # (1, 128)

    w3f = jnp.zeros((FUSED_HIDDEN, OUT_WIDTH), jnp.float32)         # (128, 128)
    w3f = w3f.at[:hidden, :action_dim].set(aw3)
    w3f = w3f.at[hidden:, action_dim:action_dim + 1].set(cw3)
    b3f = jnp.zeros((1, OUT_WIDTH), jnp.float32)
    b3f = b3f.at[:, :action_dim].set(ab3)
    b3f = b3f.at[:, action_dim:action_dim + 1].set(cb3)

    return (w1f, b1f, w2f, b2f, w3f, b3f)


def actor_critic_evaluate(state, action, fused_params, action_dim,
                          *, block_b=512, matmul_dtype=jnp.float32):
    """Pallas equivalent of ActorCritic.evaluate(state, action)."""
    B, S = state.shape
    w1f, b1f, w2f, b2f, w3f, b3f = fused_params

    # Batch tile: sublane-aligned, defaults to 512 rows for realistic PPO batches.
    TB = min(block_b, max(B, 1))
    TB = ((TB + 7) // 8) * 8
    B_pad = pl.cdiv(B, TB) * TB

    action2d = action.reshape(B, 1).astype(jnp.int32)
    if B_pad != B:
        state = jnp.pad(state, ((0, B_pad - B), (0, 0)))
        action2d = jnp.pad(action2d, ((0, B_pad - B), (0, 0)))

    kernel = functools.partial(_actor_critic_kernel,
                               action_dim=action_dim, matmul_dtype=matmul_dtype)

    out = pl.pallas_call(
        kernel,
        out_shape=jax.ShapeDtypeStruct((B_pad, OUT_WIDTH), jnp.float32),
        grid=(B_pad // TB,),
        in_specs=[
            pl.BlockSpec((TB, S), lambda i: (i, 0)),                # state (tiled on batch)
            pl.BlockSpec((TB, 1), lambda i: (i, 0)),                # action (tiled on batch)
            pl.BlockSpec((S, FUSED_HIDDEN), lambda i: (0, 0)),      # fused W1 (resident)
            pl.BlockSpec((1, FUSED_HIDDEN), lambda i: (0, 0)),      # fused b1
            pl.BlockSpec((FUSED_HIDDEN, FUSED_HIDDEN), lambda i: (0, 0)),   # fused W2
            pl.BlockSpec((1, FUSED_HIDDEN), lambda i: (0, 0)),      # fused b2
            pl.BlockSpec((FUSED_HIDDEN, OUT_WIDTH), lambda i: (0, 0)),      # fused W3
            pl.BlockSpec((1, OUT_WIDTH), lambda i: (0, 0)),         # fused b3
        ],
        out_specs=pl.BlockSpec((TB, OUT_WIDTH), lambda i: (i, 0)),
        compiler_params=pltpu.CompilerParams(
            dimension_semantics=("parallel",)),                     # shards across v7x's 2 TCs
    )(state, action2d, w1f, b1f, w2f, b2f, w3f, b3f)

    # Match torch shapes: logprobs (B,), values (B, 1), entropy (B,)
    return out[:B, 0], out[:B, 1:2], out[:B, 2]


def _reference(state, action, params):
    """Pure-JAX reference of ActorCritic.evaluate for correctness checking."""
    (aw1, ab1, aw2, ab2, aw3, ab3, cw1, cb1, cw2, cb2, cw3, cb3) = params
    h = jnp.tanh(state @ aw1 + ab1)
    h = jnp.tanh(h @ aw2 + ab2)
    logits = h @ aw3 + ab3
    log_probs = jax.nn.log_softmax(logits, axis=-1)
    probs = jnp.exp(log_probs)
    logp = jnp.take_along_axis(log_probs, action[:, None], axis=-1)[:, 0]
    ent = -jnp.sum(probs * log_probs, axis=-1)
    c = jnp.tanh(state @ cw1 + cb1)
    c = jnp.tanh(c @ cw2 + cb2)
    value = c @ cw3 + cb3
    return logp, value, ent


if __name__ == "__main__":
    B, STATE_DIM, ACTION_DIM = 8, 32, 8

    key = jax.random.PRNGKey(0)
    k_params, k_state, k_act = jax.random.split(key, 3)

    params = init_params(k_params, STATE_DIM, ACTION_DIM)
    fused = fuse_params(params, ACTION_DIM)
    state = jax.random.normal(k_state, (B, STATE_DIM), jnp.float32)
    action = jax.random.randint(k_act, (B,), 0, ACTION_DIM, dtype=jnp.int32)

    # For v6e/v7x, matmul_dtype=jnp.bfloat16 is recommended (keeps f32 accumulation);
    # default f32 preserves numeric parity and is the right choice on v5e.
    logprobs, values, entropy = actor_critic_evaluate(state, action, fused, ACTION_DIM)
    jax.block_until_ready((logprobs, values, entropy))

    assert logprobs.shape == (B,)
    assert values.shape == (B, 1)
    assert entropy.shape == (B,)

    ref_logp, ref_val, ref_ent = _reference(state, action, params)
    assert jnp.allclose(logprobs, ref_logp, rtol=1e-4, atol=1e-4)
    assert jnp.allclose(values, ref_val, rtol=1e-4, atol=1e-4)
    assert jnp.allclose(entropy, ref_ent, rtol=1e-4, atol=1e-4)

    print("KERNEL_OK")
</pallas_src>

<mosaic_0001>
module attributes {stable_mosaic.version = 11 : i64} {
  func.func @_actor_critic_kernel(%arg0: i32, %arg1: memref<8x32xf32, #tpu.memory_space<vmem>>, %arg2: memref<8x1xi32, #tpu.memory_space<vmem>>, %arg3: memref<32x128xf32, #tpu.memory_space<vmem>>, %arg4: memref<1x128xf32, #tpu.memory_space<vmem>>, %arg5: memref<128x128xf32, #tpu.memory_space<vmem>>, %arg6: memref<1x128xf32, #tpu.memory_space<vmem>>, %arg7: memref<128x128xf32, #tpu.memory_space<vmem>>, %arg8: memref<1x128xf32, #tpu.memory_space<vmem>>, %arg9: memref<8x128xf32, #tpu.memory_space<vmem>>) attributes {dimension_semantics = [#tpu.dimension_semantics<parallel>], iteration_bounds = array<i64: 1>, scalar_prefetch = 0 : i64, scratch_operands = 0 : i64, tpu.core_type = #tpu.core_type<tc>, window_params = [{transform_indices = @transform_0, window_bounds = array<i64: 8, 32>}, {transform_indices = @transform_1, window_bounds = array<i64: 8, 1>}, {pipeline_mode = #tpu.pipeline_mode<synchronous>, transform_indices = @transform_2, window_bounds = array<i64: 32, 128>}, {pipeline_mode = #tpu.pipeline_mode<synchronous>, transform_indices = @transform_3, window_bounds = array<i64: 1, 128>}, {pipeline_mode = #tpu.pipeline_mode<synchronous>, transform_indices = @transform_4, window_bounds = array<i64: 128, 128>}, {pipeline_mode = #tpu.pipeline_mode<synchronous>, transform_indices = @transform_5, window_bounds = array<i64: 1, 128>}, {pipeline_mode = #tpu.pipeline_mode<synchronous>, transform_indices = @transform_6, window_bounds = array<i64: 128, 128>}, {pipeline_mode = #tpu.pipeline_mode<synchronous>, transform_indices = @transform_7, window_bounds = array<i64: 1, 128>}, {transform_indices = @transform_8, window_bounds = array<i64: 8, 128>}]} {
    %c0 = arith.constant 0 : index
    %c0_0 = arith.constant 0 : index
    %0 = vector.load %arg1[%c0, %c0_0] : memref<8x32xf32, #tpu.memory_space<vmem>>, vector<8x32xf32>
    %c0_1 = arith.constant 0 : index
    %c0_2 = arith.constant 0 : index
    %1 = vector.load %arg3[%c0_1, %c0_2] : memref<32x128xf32, #tpu.memory_space<vmem>>, vector<32x128xf32>
    %cst = arith.constant dense<0.000000e+00> : vector<8x128xf32>
    %2 = tpu.matmul %0, %1, %cst {dimension_numbers = #tpu.dot_dimension_numbers<[1], [0], [0], [1], [0, 0, 1, 1], [], []>} : vector<8x32xf32>, vector<32x128xf32>, vector<8x128xf32> -> vector<8x128xf32>
    %c0_3 = arith.constant 0 : index
    %c0_4 = arith.constant 0 : index
    %3 = vector.load %arg4[%c0_3, %c0_4] : memref<1x128xf32, #tpu.memory_space<vmem>>, vector<1x128xf32>
    %4 = vector.broadcast %3 : vector<1x128xf32> to vector<8x128xf32>
    %5 = arith.addf %2, %4 : vector<8x128xf32>
    %6 = math.tanh %5 : vector<8x128xf32>
    %c0_5 = arith.constant 0 : index
    %c0_6 = arith.constant 0 : index
    %7 = vector.load %arg5[%c0_5, %c0_6] : memref<128x128xf32, #tpu.memory_space<vmem>>, vector<128x128xf32>
    %cst_7 = arith.constant dense<0.000000e+00> : vector<8x128xf32>
    %8 = tpu.matmul %6, %7, %cst_7 {dimension_numbers = #tpu.dot_dimension_numbers<[1], [0], [0], [1], [0, 0, 1, 1], [], []>} : vector<8x128xf32>, vector<128x128xf32>, vector<8x128xf32> -> vector<8x128xf32>
    %c0_8 = arith.constant 0 : index
    %c0_9 = arith.constant 0 : index
    %9 = vector.load %arg6[%c0_8, %c0_9] : memref<1x128xf32, #tpu.memory_space<vmem>>, vector<1x128xf32>
    %10 = vector.broadcast %9 : vector<1x128xf32> to vector<8x128xf32>
    %11 = arith.addf %8, %10 : vector<8x128xf32>
    %12 = math.tanh %11 : vector<8x128xf32>
    %c0_10 = arith.constant 0 : index
    %c0_11 = arith.constant 0 : index
    %13 = vector.load %arg7[%c0_10, %c0_11] : memref<128x128xf32, #tpu.memory_space<vmem>>, vector<128x128xf32>
    %cst_12 = arith.constant dense<0.000000e+00> : vector<8x128xf32>
    %14 = tpu.matmul %12, %13, %cst_12 {dimension_numbers = #tpu.dot_dimension_numbers<[1], [0], [0], [1], [0, 0, 1, 1], [], []>} : vector<8x128xf32>, vector<128x128xf32>, vector<8x128xf32> -> vector<8x128xf32>
    %c0_13 = arith.constant 0 : index
    %c0_14 = arith.constant 0 : index
    %15 = vector.load %arg8[%c0_13, %c0_14] : memref<1x128xf32, #tpu.memory_space<vmem>>, vector<1x128xf32>
    %16 = vector.broadcast %15 : vector<1x128xf32> to vector<8x128xf32>
    %17 = arith.addf %14, %16 : vector<8x128xf32>
    %18 = tpu.iota {dimensions = array<i32: 1>} : vector<8x128xi32>
    %c8_i32 = arith.constant 8 : i32
    %19 = vector.broadcast %c8_i32 : i32 to vector<8x128xi32>
    %20 = arith.cmpi slt, %18, %19 : vector<8x128xi32>
    %cst_15 = arith.constant -1.000000e+30 : f32
    %21 = vector.broadcast %cst_15 : f32 to vector<8x128xf32>
    %22 = arith.select %20, %17, %21 : vector<8x128xi1>, vector<8x128xf32>
    %cst_16 = arith.constant dense<0xFF800000> : vector<8xf32>
    %23 = vector.multi_reduction <maximumf>, %22, %cst_16 [1] : vector<8x128xf32> to vector<8xf32>
    %24 = vector.shape_cast %23 : vector<8xf32> to vector<8x1xf32>
    %25 = vector.broadcast %24 : vector<8x1xf32> to vector<8x128xf32>
    %26 = arith.subf %22, %25 : vector<8x128xf32>
    %27 = math.exp %26 : vector<8x128xf32>
    %cst_17 = arith.constant dense<0.000000e+00> : vector<8xf32>
    %28 = vector.multi_reduction <add>, %27, %cst_17 [1] : vector<8x128xf32> to vector<8xf32>
    %29 = vector.shape_cast %28 : vector<8xf32> to vector<8x1xf32>
    %30 = tpu.reciprocal %29 : vector<8x1xf32> -> vector<8x1xf32>
    %31 = vector.broadcast %30 : vector<8x1xf32> to vector<8x128xf32>
    %32 = arith.mulf %27, %31 : vector<8x128xf32>
    %33 = math.log %29 : vector<8x1xf32>
    %34 = vector.broadcast %33 : vector<8x1xf32> to vector<8x128xf32>
    %35 = arith.subf %26, %34 : vector<8x128xf32>
    %c0_18 = arith.constant 0 : index
    %c0_19 = arith.constant 0 : index
    %36 = vector.load %arg2[%c0_18, %c0_19] : memref<8x1xi32, #tpu.memory_space<vmem>>, vector<8x1xi32>
    %37 = vector.broadcast %36 : vector<8x1xi32> to vector<8x128xi32>
    %38 = arith.cmpi eq, %18, %37 : vector<8x128xi32>
    %39 = arith.extui %38 : vector<8x128xi1> to vector<8x128xi32>
    %40 = arith.sitofp %39 : vector<8x128xi32> to vector<8x128xf32>
    %41 = arith.mulf %40, %35 : vector<8x128xf32>
    %cst_20 = arith.constant dense<0.000000e+00> : vector<8xf32>
    %42 = vector.multi_reduction <add>, %41, %cst_20 [1] : vector<8x128xf32> to vector<8xf32>
    %43 = vector.shape_cast %42 : vector<8xf32> to vector<8x1xf32>
    %c8_i32_21 = arith.constant 8 : i32
    %44 = vector.broadcast %c8_i32_21 : i32 to vector<8x128xi32>
    %45 = arith.cmpi slt, %18, %44 : vector<8x128xi32>
    %46 = arith.mulf %32, %35 : vector<8x128xf32>
    %cst_22 = arith.constant 0.000000e+00 : f32
    %47 = vector.broadcast %cst_22 : f32 to vector<8x128xf32>
    %48 = arith.select %45, %46, %47 : vector<8x128xi1>, vector<8x128xf32>
    %cst_23 = arith.constant dense<0.000000e+00> : vector<8xf32>
    %49 = vector.multi_reduction <add>, %48, %cst_23 [1] : vector<8x128xf32> to vector<8xf32>
    %50 = vector.shape_cast %49 : vector<8xf32> to vector<8x1xf32>
    %cst_24 = arith.constant 0.000000e+00 : f32
    %51 = vector.broadcast %cst_24 : f32 to vector<8x1xf32>
    %52 = arith.subf %51, %50 : vector<8x1xf32>
    %c8_i32_25 = arith.constant 8 : i32
    %53 = vector.broadcast %c8_i32_25 : i32 to vector<8x128xi32>
    %54 = arith.cmpi eq, %18, %53 : vector<8x128xi32>
    %cst_26 = arith.constant 0.000000e+00 : f32
    %55 = vector.broadcast %cst_26 : f32 to vector<8x128xf32>
    %56 = arith.select %54, %17, %55 : vector<8x128xi1>, vector<8x128xf32>
    %cst_27 = arith.constant dense<0.000000e+00> : vector<8xf32>
    %57 = vector.multi_reduction <add>, %56, %cst_27 [1] : vector<8x128xf32> to vector<8xf32>
    %58 = vector.shape_cast %57 : vector<8xf32> to vector<8x1xf32>
    %c0_i32 = arith.constant 0 : i32
    %59 = vector.broadcast %c0_i32 : i32 to vector<8x128xi32>
    %60 = arith.cmpi eq, %18, %59 : vector<8x128xi32>
    %c1_i32 = arith.constant 1 : i32
    %61 = vector.broadcast %c1_i32 : i32 to vector<8x128xi32>
    %62 = arith.cmpi eq, %18, %61 : vector<8x128xi32>
    %c2_i32 = arith.constant 2 : i32
    %63 = vector.broadcast %c2_i32 : i32 to vector<8x128xi32>
    %64 = arith.cmpi eq, %18, %63 : vector<8x128xi32>
    %cst_28 = arith.constant 0.000000e+00 : f32
    %65 = vector.shape_cast %52 : vector<8x1xf32> to vector<8x1xf32>
    %66 = vector.broadcast %65 : vector<8x1xf32> to vector<8x128xf32>
    %67 = vector.broadcast %cst_28 : f32 to vector<8x128xf32>
    %68 = arith.select %64, %66, %67 : vector<8x128xi1>, vector<8x128xf32>
    %69 = vector.shape_cast %58 : vector<8x1xf32> to vector<8x1xf32>
    %70 = vector.broadcast %69 : vector<8x1xf32> to vector<8x128xf32>
    %71 = arith.select %62, %70, %68 : vector<8x128xi1>, vector<8x128xf32>
    %72 = vector.shape_cast %43 : vector<8x1xf32> to vector<8x1xf32>
    %73 = vector.broadcast %72 : vector<8x1xf32> to vector<8x128xf32>
    %74 = arith.select %60, %73, %71 : vector<8x128xi1>, vector<8x128xf32>
    %c0_29 = arith.constant 0 : index
    %c0_30 = arith.constant 0 : index
    %75 = vector.load %arg9[%c0_29, %c0_30] : memref<8x128xf32, #tpu.memory_space<vmem>>, vector<8x128xf32>
    tpu.vector_store %arg9[%c0_29, %c0_30], %74 {strides = array<i32>} : memref<8x128xf32, #tpu.memory_space<vmem>>, vector<8x128xf32>,
    return
  }
  func.func @transform_0(%arg0: i32) -> (i32, i32) {
    %c0_i32 = arith.constant 0 : i32
    %c0_i32_0 = arith.constant 0 : i32
    return %arg0, %c0_i32 : i32, i32
  }
  func.func @transform_1(%arg0: i32) -> (i32, i32) {
    %c0_i32 = arith.constant 0 : i32
    %c0_i32_0 = arith.constant 0 : i32
    return %arg0, %c0_i32 : i32, i32
  }
  func.func @transform_2(%arg0: i32) -> (i32, i32) {
    %c0_i32 = arith.constant 0 : i32
    %c0_i32_0 = arith.constant 0 : i32
    %c0_i32_1 = arith.constant 0 : i32
    return %c0_i32, %c0_i32_0 : i32, i32
  }
  func.func @transform_3(%arg0: i32) -> (i32, i32) {
    %c0_i32 = arith.constant 0 : i32
    %c0_i32_0 = arith.constant 0 : i32
    %c0_i32_1 = arith.constant 0 : i32
    return %c0_i32, %c0_i32_0 : i32, i32
  }
  func.func @transform_4(%arg0: i32) -> (i32, i32) {
    %c0_i32 = arith.constant 0 : i32
    %c0_i32_0 = arith.constant 0 : i32
    %c0_i32_1 = arith.constant 0 : i32
    return %c0_i32, %c0_i32_0 : i32, i32
  }
  func.func @transform_5(%arg0: i32) -> (i32, i32) {
    %c0_i32 = arith.constant 0 : i32
    %c0_i32_0 = arith.constant 0 : i32
    %c0_i32_1 = arith.constant 0 : i32
    return %c0_i32, %c0_i32_0 : i32, i32
  }
  func.func @transform_6(%arg0: i32) -> (i32, i32) {
    %c0_i32 = arith.constant 0 : i32
    %c0_i32_0 = arith.constant 0 : i32
    %c0_i32_1 = arith.constant 0 : i32
    return %c0_i32, %c0_i32_0 : i32, i32
  }
  func.func @transform_7(%arg0: i32) -> (i32, i32) {
    %c0_i32 = arith.constant 0 : i32
    %c0_i32_0 = arith.constant 0 : i32
    %c0_i32_1 = arith.constant 0 : i32
    return %c0_i32, %c0_i32_0 : i32, i32
  }
  func.func @transform_8(%arg0: i32) -> (i32, i32) {
    %c0_i32 = arith.constant 0 : i32
    %c0_i32_0 = arith.constant 0 : i32
    return %arg0, %c0_i32 : i32, i32
  }
}

</mosaic_0001>

<bundles_post_ra>
// kernel: tpu_custom_call.1
= control target key start
LH: loop header
LB: loop body
LE: loop exit
PB: predicated region body
PF: predicated region fallthrough
CT: control target
= control target key end

     0   :  { %13 = vsyncpa [#allocation3], 0  ;;  %s859_s0 = inlined_call_operand.vmem [shape: f32[8,32], index: 0, kind: input, shape index: {}]   ;;  %s860_s1 = inlined_call_operand.vmem [shape: s32[8,1], index: 1, kind: input, shape index: {}]   ;;  %s861_s2 = inlined_call_operand.hbm [shape: f32[32,128], index: 2, kind: input, shape index: {}]   ;;  %s862_s3 = inlined_call_operand.vmem [shape: f32[1,128], index: 3, kind: input, shape index: {}]   ;;  %s863_s4 = inlined_call_operand.hbm [shape: f32[128,128], index: 4, kind: input, shape index: {}]   ;;  %s864_s5 = inlined_call_operand.vmem [shape: f32[1,128], index: 5, kind: input, shape index: {}]   ;;  %s865_s6 = inlined_call_operand.hbm [shape: f32[128,128], index: 6, kind: input, shape index: {}]   ;;  %s866_s7 = inlined_call_operand.vmem [shape: f32[1,128], index: 7, kind: input, shape index: {}]   ;;  %s867_s8 = inlined_call_operand.hbm [shape: f32[8,128], index: 8, kind: output, shape index: {}]  }
   0x1   :  { %14 = vsyncpa [#allocation6], 0 }
   0x2   :  { %15 = vsyncpa [#allocation4], 0  ;;  %s698_s27 = smov [#allocation5]   ;;  %s699_s29 = smov [#allocation2]  }
   0x3   :  { %s39_s28 = sshll.u32 %s698_s27, 4  ;;  %s25_s30 = sshll.u32 %s699_s29, 4  ;;  %s40_s28 = int_to_ptr.vmem [resolvable:$true] %s39_s28  ;;  %s753_s30 = int_to_ptr.vmem [resolvable:$true] %s25_s30 }
   0x4   :  { %s604_s11 = scalar_lea.hbm %s863_s4, 2048 }
   0x5   :  { %p605_p0 = scmp.ne.s32.totalorder %s863_s4, %s604_s11  ;;  %p608_p1 = scmp.lt.u32.totalorder %s604_s11, %s863_s4 }
   0x7   :  { %p610_p2 = pnand %p608_p1, %p605_p0 }
   0x9   :  { %613 = shalt.err (!%p610_p2)
}
   0xa   :  { %s614_s16 = scalar_lea.vmem %s40_s28, 2048  ;;  %p619_p4 = scmp.lt.s32.totalorder %s40_s28, %s40_s28 }
   0xb   :  { %p615_p3 = scmp.ne.s32.totalorder %s40_s28, %s614_s16  ;;  %p620_p5 = scmp.lt.s32.totalorder %s614_s16, %s614_s16 }
   0xd   :  { %p621_p6 = por %p620_p5, %p619_p4 }
   0xf   :  { %p622_p7 = pnand %p621_p6, %p615_p3 }
  0x11   :  { %625 = shalt.err (!%p622_p7)
}
  0x12   :  { %s700_s17 = smov 128   ;;  %s701_s18 = smov 8  }
  0x13   :  { %45 = dma.hbm_to_vmem [thread:$0]  %s863_s4, 2048, %s40_s28, [#allocation6], %s700_s17, %s700_s17, %s701_s18  }
  0x14   :  { %s626_s23 = scalar_lea.hbm %s861_s2, 512 }
  0x15   :  { %p627_p8 = scmp.ne.s32.totalorder %s861_s2, %s626_s23  ;;  %p630_p9 = scmp.lt.u32.totalorder %s626_s23, %s861_s2 }
  0x17   :  { %p632_p10 = pnand %p630_p9, %p627_p8 }
  0x19   :  { %635 = shalt.err (!%p632_p10)
}
  0x1a   :  { %s636_s29 = scalar_lea.vmem %s753_s30, 512  ;;  %p641_p12 = scmp.lt.s32.totalorder %s753_s30, %s753_s30 }
  0x1b   :  { %p637_p11 = scmp.ne.s32.totalorder %s753_s30, %s636_s29  ;;  %p642_p13 = scmp.lt.s32.totalorder %s636_s29, %s636_s29 }
  0x1d   :  { %p643_p0 = por %p642_p13, %p641_p12 }
  0x1f   :  { %p644_p1 = pnand %p643_p0, %p637_p11 }
  0x21   :  { %647 = shalt.err (!%p644_p1)
}
  0x22   :  { %31 = dma.hbm_to_vmem [thread:$0]  %s861_s2, 512, %s753_s30, [#allocation3], %s700_s17, %s700_s17, %s701_s18  }
  0x23   :  { %s702_s9 = smov [#allocation7]   ;;  %s648_s13 = scalar_lea.hbm %s865_s6, 2048 }
  0x24   :  { %s53_s10 = sshll.u32 %s702_s9, 4  ;;  %p649_p2 = scmp.ne.s32.totalorder %s865_s6, %s648_s13  ;;  %s54_s10 = int_to_ptr.vmem [resolvable:$true] %s53_s10 }
  0x25   :  { %p652_p3 = scmp.lt.u32.totalorder %s648_s13, %s865_s6 }
  0x27   :  { %p654_p4 = pnand %p652_p3, %p649_p2 }
  0x29   :  { %657 = shalt.err (!%p654_p4)
}
  0x2a   :  { %s658_s20 = scalar_lea.vmem %s54_s10, 2048  ;;  %p663_p6 = scmp.lt.s32.totalorder %s54_s10, %s54_s10 }
  0x2b   :  { %p659_p5 = scmp.ne.s32.totalorder %s54_s10, %s658_s20  ;;  %p664_p7 = scmp.lt.s32.totalorder %s658_s20, %s658_s20 }
  0x2d   :  { %p665_p8 = por %p664_p7, %p663_p6 }
  0x2f   :  { %p666_p9 = pnand %p665_p8, %p659_p5 }
  0x31   :  { %669 = shalt.err (!%p666_p9)
}
  0x32   :  { %59 = dma.hbm_to_vmem [thread:$0]  %s865_s6, 2048, %s54_s10, [#allocation6], %s700_s17, %s700_s17, %s701_s18  }
  0x33   :  { %692 = dma.done.wait [#allocation3], 512  }
  0x34   :  { %693 = vsyncadd [#allocation3], 4294966784 }
  0x35   :  { %694 = dma.done.wait [#allocation6], 4096  }
  0x36   :  { %695 = vsyncadd [#allocation6], 4294963200  ;;  %v703_v0 = vmov 0.0|0.0   ;;  %vm704_vm0 = vmmov 0   ;;  %v705_v1 = vmov 0.0   ;;  %v72_v2 = vld [vmem:[#allocation2] sm:$0xff] }
  0x37   :  { %528 = vmatprep.subr.bf16.mxu0 %v703_v0  ;;  %455 = vmatprep.mubr.msk.f32.mxu0 %vm704_vm0, %v705_v1  ;;  %v73_v3 = vld [vmem:[#allocation2 + $0x8] sm:$0xff]  ;;  %v74_v4 = vld [vmem:[#allocation2 + $0x10] sm:$0xff]  ;;  %v75_v6 = vld [vmem:[#allocation2 + $0x18] sm:$0xff]  ;;  %vm83_vm1 = vcmask 261120  }
  0x38   :  { %534 = vmatprep.subr.bf16.mxu1 %v703_v0  ;;  %490 = vmatprep.mubr.msk.f32.mxu1 %vm704_vm0, %v705_v1  ;;  %v529_v5 = vpack.c.bf16 %v73_v3, %v72_v2  ;;  %v158_v7 = vld [vmem:[#allocation5] sm:$0xff]  ;;  %v159_v8 = vld [vmem:[#allocation5 + $0x8] sm:$0xff]  ;;  %v160_v9 = vld [vmem:[#allocation5 + $0x10] sm:$0xff]  ;;  %v532_v11 = vpack.c.bf16 %v75_v6, %v74_v4 }
  0x39   :  { %v161_v10 = vld [vmem:[#allocation5 + $0x18] sm:$0xff]  ;;  %v535_v12 = vpack.c.bf16 %v159_v8, %v158_v7  ;;  %v162_v14 = vld [vmem:[#allocation5 + $0x20] sm:$0xff]  ;;  %v163_v15 = vld [vmem:[#allocation5 + $0x28] sm:$0xff] }
  0x3a   :  { %530 = vmatpush3.bf16.msra.mxu0 %v529_v5  ;;  %v538_v13 = vpack.c.bf16 %v161_v10, %v160_v9  ;;  %v71_v16 = vld [vmem:[%s859_s0] sm:$0xff]  ;;  %v541_v17 = vpack.c.bf16 %v163_v15, %v162_v14  ;;  %v164_v18 = vld [vmem:[#allocation5 + $0x30] sm:$0xff]  ;;  %v165_v19 = vld [vmem:[#allocation5 + $0x38] sm:$0xff]  ;;  %v345_v5 = vlaneseq }
  0x3b   :  { %531 = vmatprep.subr.bf16.mxu0 %v703_v0  ;;  %536 = vmatpush3.bf16.msra.mxu1 %v535_v12  ;;  %v544_v20 = vpack.c.bf16 %v165_v19, %v164_v18  ;;  %v166_v21 = vld [vmem:[#allocation5 + $0x40] sm:$0xff]  ;;  %v167_v22 = vld [vmem:[#allocation5 + $0x48] sm:$0xff]  ;;  %v168_v24 = vld [vmem:[#allocation5 + $0x50] sm:$0xff]  ;;  %v706_v12 = vmov 0  }
  0x3c   :  { %537 = vmatprep.subr.bf16.mxu1 %v703_v0  ;;  %v547_v23 = vpack.c.bf16 %v167_v22, %v166_v21  ;;  %v169_v25 = vld [vmem:[#allocation5 + $0x58] sm:$0xff]  ;;  %v170_v27 = vld [vmem:[#allocation5 + $0x60] sm:$0xff]  ;;  %v171_v28 = vld [vmem:[#allocation5 + $0x68] sm:$0xff]  ;;  %v346_v6 = vand.u32 127, %v345_v5  ;;  %592 = vset.pattern.permute.xlu1 %v706_v12 }
  0x3d   :  { %v550_v26 = vpack.c.bf16 %v169_v25, %v168_v24  ;;  %v553_v29 = vpack.c.bf16 %v171_v28, %v170_v27  ;;  %v172_v30 = vld [vmem:[#allocation5 + $0x70] sm:$0xff]  ;;  %v173_v31 = vld [vmem:[#allocation5 + $0x78] sm:$0xff]  ;;  %v252_v33 = vld [vmem:[#allocation7] sm:$0xff]  ;;  %593 = vset.pattern.permute.xlu0 %v706_v12 }
  0x3e   :  { %533 = vmatpush3.bf16.msra.mxu0 %v532_v11  ;;  %v556_v32 = vpack.c.bf16 %v173_v31, %v172_v30  ;;  %v253_v34 = vld [vmem:[#allocation7 + $0x8] sm:$0xff]  ;;  %v254_v35 = vld [vmem:[#allocation7 + $0x10] sm:$0xff]  ;;  %v255_v37 = vld [vmem:[#allocation7 + $0x18] sm:$0xff]  ;;  %vm347_vm2 = vcmp.lt.s32.totalorder %v346_v6, 8  ;;  %vm376_vm3 = vcmp.eq.s32.totalorder %v346_v6, 8  ;;  %vm382_vm5 = vcmp.eq.s32.totalorder %v346_v6, 2 }
  0x3f   :  { %558 = vmatprep.subr.bf16.mxu0 %v703_v0  ;;  %539 = vmatpush3.bf16.msra.mxu1 %v538_v13  ;;  %v559_v36 = vpack.c.bf16 %v253_v34, %v252_v33  ;;  %v562_v38 = vpack.c.bf16 %v255_v37, %v254_v35  ;;  %v256_v39 = vld [vmem:[#allocation7 + $0x20] sm:$0xff]  ;;  %v257_v40 = vld [vmem:[#allocation7 + $0x28] sm:$0xff]  ;;  %v258_v42 = vld [vmem:[#allocation7 + $0x30] sm:$0xff]  ;;  %vm381_vm6 = vcmp.eq.s32.totalorder %v346_v6, 1  ;;  %vm380_vm7 = vcmp.eq.s32.totalorder %v346_v6, 0 }
  0x40   :  { %540 = vmatprep.subr.bf16.mxu1 %v703_v0  ;;  %v565_v41 = vpack.c.bf16 %v257_v40, %v256_v39  ;;  %v259_v43 = vld [vmem:[#allocation7 + $0x38] sm:$0xff]  ;;  %v260_v45 = vld [vmem:[#allocation7 + $0x40] sm:$0xff]  ;;  %v261_v46 = vld [vmem:[#allocation7 + $0x48] sm:$0xff] }
  0x41   :  { %456 = vmatmul.mubr.msk.f32.vlgmr.msra.gmra.mrb[0].mxu0 %vm83_vm1, %v71_v16  ;;  %v568_v44 = vpack.c.bf16 %v259_v43, %v258_v42  ;;  %v571_v47 = vpack.c.bf16 %v261_v46, %v260_v45  ;;  %v403_v48 = vld [vmem:[%s862_s3] ss:$0 sm:$0xff]  ;;  %v262_v53 = vld [vmem:[#allocation7 + $0x50] sm:$0xff]  ;;  %v263_v54 = vld [vmem:[#allocation7 + $0x58] sm:$0xff] }
  0x42   :  { %525 = vmatprep.mubr.msk.f32.mxu0 %vm704_vm0, %v705_v1  ;;  %560 = vmatpush3.bf16.msra.mxu0 %v559_v36  ;;  %v574_v55 = vpack.c.bf16 %v263_v54, %v262_v53  ;;  %v264_v56 = vld [vmem:[#allocation7 + $0x60] sm:$0xff]  ;;  %v265_v57 = vld [vmem:[#allocation7 + $0x68] sm:$0xff]  ;;  %v266_v59 = vld [vmem:[#allocation7 + $0x70] sm:$0xff] }
  0x43   :  { %542 = vmatpush3.bf16.msra.mxu1 %v541_v17  ;;  %561 = vmatprep.subr.bf16.mxu0 %v703_v0  ;;  %v577_v58 = vpack.c.bf16 %v265_v57, %v264_v56  ;;  %v267_v60 = vld [vmem:[#allocation7 + $0x78] sm:$0xff]  ;;  %v405_v62 = vld [vmem:[%s864_s5] ss:$0 sm:$0xff] }
  0x44   :  { %543 = vmatprep.subr.bf16.mxu1 %v703_v0  ;;  %v580_v61 = vpack.c.bf16 %v267_v60, %v266_v59  ;;  %v406_v7 = vld [vmem:[%s866_s7] ss:$0 sm:$0xff] }
  0x45   :  { %v361_v11 = vld [vmem:[%s860_s1] sm:$0xff]  ;;  %s707_s1 = smov [#allocation8]  }
  0x46   :  { %563 = vmatpush3.bf16.msra.mxu0 %v562_v38  ;;  %363 = vperm.xlu1 %592, %v361_v11   ;;  %s393_s7 = sshll.u32 %s707_s1, 4  ;;  %s394_s7 = int_to_ptr.vmem [resolvable:$true] %s393_s7 }
  0x47   :  { %545 = vmatpush3.bf16.msra.mxu1 %v544_v20  ;;  %564 = vmatprep.subr.bf16.mxu0 %v703_v0  ;;  %s670_s25 = scalar_lea.vmem %s394_s7, 128  ;;  %p675_p11 = scmp.lt.s32.totalorder %s394_s7, %s394_s7 }
  0x48   :  { %546 = vmatprep.subr.bf16.mxu1 %v703_v0  ;;  %p671_p10 = scmp.ne.s32.totalorder %s394_s7, %s670_s25  ;;  %p676_p12 = scmp.lt.s32.totalorder %s670_s25, %s670_s25 }
  0x4a   :  { %566 = vmatpush3.bf16.msra.mxu0 %v565_v41  ;;  %p677_p13 = por %p676_p12, %p675_p11 }
  0x4b   :  { %548 = vmatpush3.bf16.msra.mxu1 %v547_v23  ;;  %567 = vmatprep.subr.bf16.mxu0 %v703_v0 }
  0x4c   :  { %549 = vmatprep.subr.bf16.mxu1 %v703_v0  ;;  %p678_p0 = pnand %p677_p13, %p671_p10 }
  0x4e   :  { %569 = vmatpush3.bf16.msra.mxu0 %v568_v44 }
  0x4f   :  { %551 = vmatpush3.bf16.msra.mxu1 %v550_v26  ;;  %570 = vmatprep.subr.bf16.mxu0 %v703_v0 }
  0x50   :  { %552 = vmatprep.subr.bf16.mxu1 %v703_v0 }
  0x52   :  { %572 = vmatpush3.bf16.msra.mxu0 %v571_v47 }
  0x53   :  { %554 = vmatpush3.bf16.msra.mxu1 %v553_v29  ;;  %573 = vmatprep.subr.bf16.mxu0 %v703_v0 }
  0x54   :  { %555 = vmatprep.subr.bf16.mxu1 %v703_v0 }
  0x56   :  { %575 = vmatpush3.bf16.msra.mxu0 %v574_v55 }
  0x57   :  { %557 = vmatpush3.bf16.msra.mxu1 %v556_v32  ;;  %576 = vmatprep.subr.bf16.mxu0 %v703_v0 }
  0x5a   :  { %578 = vmatpush3.bf16.msra.mxu0 %v577_v58 }
  0x5b   :  { %579 = vmatprep.subr.bf16.mxu0 %v703_v0 }
  0x5e   :  { %581 = vmatpush3.bf16.msra.mxu0 %v580_v61 }
  0xc5   :  { %v364_v19 = vpop.permute.xlu1 %363 }
  0xc6   :  { %vm365_vm4 = vcmp.eq.s32.totalorder %v346_v6, %v364_v19 }
  0xc7   :  { %v407_v23 = vsel %vm365_vm4, 1.0, %v705_v1 }
 0x114   :  { %v153_v49 = vpop.f32.mrb[0].mxu0 }
 0x115   :  { %v154_v50 = vadd.f32 %v403_v48, %v153_v49  ;;  %v457_v51 = vpop.f32.mrb[1].mxu0 }
 0x117   :  { %594 = vtanh.f32 %v154_v50 }
 0x121   :  { %v595_v52 = vpop.eup %594 }
 0x122   :  { %491 = vmatmul.mubr.f32.vlgmr.msra.gmra.mrb[0].mxu1 %v595_v52 }
 0x1f5   :  { %v247_v63 = vpop.f32.mrb[0].mxu1 }
 0x1f6   :  { %v248_v2 = vadd.f32 %v405_v62, %v247_v63  ;;  %v492_v3 = vpop.f32.mrb[1].mxu1 }
 0x1f8   :  { %596 = vtanh.f32 %v248_v2 }
 0x202   :  { %v597_v4 = vpop.eup %596 }
 0x203   :  { %526 = vmatmul.mubr.f32.vlgmr.msra.gmra.mrb[2].mxu0 %v597_v4 }
 0x2d6   :  { %v341_v8 = vpop.f32.mrb[2].mxu0 }
 0x2d7   :  { %v342_v0 = vadd.f32 %v406_v7, %v341_v8  ;;  %v527_v9 = vpop.f32.mrb[3].mxu0 }
 0x2d9   :  { %v348_v10 = vsel %vm347_vm2, %v342_v0, -1e+30  ;;  %v377_v17 = vsel %vm376_vm3, %v342_v0, 0.0 }
 0x2da   :  { %349 = vmax.xlane.f32.xlu0 %v348_v10 }
 0x367   :  { %v350_v13 = vpop.xlane.xlu0 %349 }
 0x368   :  { %v351_v14 = vsub.f32 %v348_v10, %v350_v13 }
 0x36a   :  { %v352_v15 = vmul.f32 1.442695, %v351_v14 }
 0x36c   :  { %598 = vpow2.f32 %v352_v15 }
 0x376   :  { %v599_v16 = vpop.eup %598 }
 0x377   :  { %354 = vadd.xlane.f32.xlu0 %v599_v16 }
 0x37b   :  { %378 = vadd.xlane.f32.xlu0 %v377_v17 }
 0x404   :  { %v355_v18 = vpop.xlane.xlu0 %354 }
 0x405   :  { %600 = vrcp.f32 %v355_v18 }
 0x406   :  { %602 = vlog2.f32 %v355_v18 }
 0x408   :  { %v379_v29 = vpop.xlane.xlu0 %378 }
 0x40f   :  { %v601_v20 = vpop.eup %600 }
 0x410   :  { %v603_v21 = vpop.eup %602  ;;  %v357_v25 = vmul.f32 %v601_v20, %v599_v16 }
 0x411   :  { %v359_v22 = vmul.f32 0.6931472, %v603_v21 }
 0x413   :  { %v360_v24 = vsub.f32 %v351_v14, %v359_v22 }
 0x415   :  { %v368_v26 = vmul.f32 %v407_v23, %v360_v24  ;;  %v371_v27 = vmul.f32 %v360_v24, %v357_v25 }
 0x417   :  { %369 = vadd.xlane.f32.xlu0 %v368_v26  ;;  %v372_v28 = vsel %vm347_vm2, %v371_v27, 0.0 }
 0x418   :  { %373 = vadd.xlane.f32.xlu1 %v372_v28 }
 0x4a4   :  { %v370_v33 = vpop.xlane.xlu0 %369 }
 0x4a5   :  { %v374_v30 = vpop.xlane.xlu1 %373 }
 0x4a6   :  { %v375_v31 = vsub.f32 0.0, %v374_v30 }
 0x4a8   :  { %v383_v32 = vsel %vm382_vm5, %v375_v31, 0.0 }
 0x4a9   :  { %v384_v34 = vsel %vm381_vm6, %v379_v29, %v383_v32 }
 0x4aa   :  { %v385_v1 = vsel %vm380_vm7, %v370_v33, %v384_v34 }
 0x4ab   :  { %386 = vst [vmem:[#allocation8] sm:$0xff] %v385_v1 }
 0x4ac   :  { %681 = shalt.err (!%p678_p0)
}
 0x4ad   :  { %s682_s29 = scalar_lea.hbm %s867_s8, 128 }
 0x4ae   :  { %p683_p1 = scmp.ne.s32.totalorder %s867_s8, %s682_s29  ;;  %p686_p2 = scmp.lt.u32.totalorder %s682_s29, %s867_s8 }
 0x4b0   :  { %p688_p3 = pnand %p686_p2, %p683_p1 }
 0x4b2   :  { %691 = shalt.err (!%p688_p3)
}
 0x4b3   :  { %396 = dma.vmem_to_hbm [thread:$0]  %s394_s7, 128, %s867_s8, [#allocation4]  }
 0x4b4   :  { %696 = dma.done.wait [#allocation4], 128  }
 0x4b5   :  { %697 = vsyncadd [#allocation4], 4294967168 }
 0x4b6   :  { %400 = vsyncpa [#allocation3], 1 }
 0x4b7   :  { %401 = vsyncpa [#allocation6], 1 }
 0x4b8   :  { %402 = vsyncpa [#allocation4], 1 }

</bundles_post_ra>
